<compile_context>
chip_gen: v5e
topology: v5e:2x2
jax: 0.10.0
libtpu: 0.0.40
codegen_flags: <defaults>
</compile_context>

<pallas_src>
import jax
import jax.numpy as jnp
from jax.experimental import pallas as pl
from jax.experimental.pallas import tpu as pltpu

LANE = 128
_TARGET_TILE_BYTES = 2 * 1024 * 1024   # ~2 MiB per x tile (roofline knee 1-4 MiB)
_MIN_PALLAS_BYTES = 1 * 1024 * 1024    # below this, plain XLA is faster


def _drop_path_kernel(s_ref, x_ref, o_ref):
    # s_ref: (TB, 1) per-sample scale (0 or 1/keep_prob), already in x's dtype.
    # x_ref / o_ref: (TB, TN) tile of the flattened input / output.
    o_ref[...] = x_ref[...] * s_ref[...]


def _choose_block(B, n, itemsize):
    """Pick a (TB, TN) tile for the flattened (B, n) view.

    Constraints: TN must be a multiple of 128 or equal n; TB a multiple of 8
    or equal B. Target ~2 MiB per x tile so the HBM-bound copy sits at the
    measured roofline knee while double-buffered in+out stays ~8 MiB of VMEM.
    """
    target_elems = max(LANE, _TARGET_TILE_BYTES // itemsize)
    if B <= 8:
        tb = B                                   # full batch dim (exempt from /8)
    else:
        rows_budget = max(8, ((target_elems // max(n, 1)) // 8) * 8)
        tb = min((B // 8) * 8, rows_budget)      # multiple of 8
    per_row = max(LANE, target_elems // tb)
    if n <= per_row:
        tn = n                                   # full lane dim (exempt from /128)
    else:
        tn = (per_row // LANE) * LANE            # multiple of 128; ragged tail masked
    return tb, tn


def drop_path(x, drop_prob: float = 0.0, training: bool = False, *,
              seed: int = 0, force_pallas: bool = False):
    """Pallas TPU implementation of stochastic depth (per-sample drop)."""
    if drop_prob == 0.0 or not training:
        return x

    # NOTE: drop_prob == 1.0 gives 0/0 = NaN in `scale`, same as the PyTorch
    # reference. Callers should vary `seed` per training step.
    keep_prob = 1.0 - drop_prob
    B = x.shape[0]
    n = 1
    for d in x.shape[1:]:
        n *= d

    # Per-sample 0/1 mask and scale, computed in the wrapper (no in-kernel PRNG).
    u = jax.random.uniform(jax.random.PRNGKey(seed), (B,), dtype=jnp.float32)
    mask = jnp.floor(jnp.float32(keep_prob) + u)
    scale = (mask / jnp.float32(keep_prob)).astype(x.dtype)

    total_bytes = B * n * x.dtype.itemsize
    if total_bytes < _MIN_PALLAS_BYTES and not force_pallas:
        # Tiny tensors: pallas_call launch + pipeline prologue/epilogue exceed
        # the whole op; XLA's fused broadcast multiply already runs at roofline.
        return x * scale.reshape((B,) + (1,) * (x.ndim - 1))

    xf = x.reshape(B, n)       # free: contiguous metadata reshape, no HBM pass
    s2 = scale.reshape(B, 1)

    tb, tn = _choose_block(B, n, x.dtype.itemsize)
    grid = (pl.cdiv(B, tb), pl.cdiv(n, tn))

    out = pl.pallas_call(
        _drop_path_kernel,
        out_shape=jax.ShapeDtypeStruct((B, n), x.dtype),
        grid_spec=pltpu.PrefetchScalarGridSpec(
            num_scalar_prefetch=0,
            grid=grid,
            in_specs=[
                pl.BlockSpec((tb, 1), lambda bi, ni: (bi, 0)),
                pl.BlockSpec((tb, tn), lambda bi, ni: (bi, ni)),
            ],
            out_specs=pl.BlockSpec((tb, tn), lambda bi, ni: (bi, ni)),
        ),
        compiler_params=pltpu.CompilerParams(
            dimension_semantics=("parallel", "parallel"),
            vmem_limit_bytes=32 * 1024 * 1024,
        ),
    )(s2, xf)

    # TODO(synk): for very high drop_prob, skip the input DMA of dropped
    # samples via a prefetched-scale-driven index_map + pl.when zero-write.
    return out.reshape(x.shape)


class DropPath:
    """Mirror of the PyTorch DropPath module (forward pass only)."""

    def __init__(self, drop_prob=None):
        self.drop_prob = drop_prob
        self.training = True

    def __call__(self, x, seed: int = 0, force_pallas: bool = False):
        p = 0.0 if self.drop_prob is None else self.drop_prob
        return drop_path(x, p, self.training, seed=seed, force_pallas=force_pallas)


def _check_semantics(x, y, keep_prob):
    # Each sample must be either all-zero or exactly x / keep_prob.
    for b in range(x.shape[0]):
        yb, xb = y[b], x[b]
        is_zero = bool(jnp.all(yb == 0.0))
        is_scaled = bool(jnp.allclose(yb, xb / keep_prob, atol=1e-5, rtol=1e-5))
        assert is_zero or is_scaled, "per-sample mask semantics violated"


if __name__ == "__main__":
    key = jax.random.PRNGKey(0)
    keep_prob = 0.5
    module = DropPath(drop_prob=0.5)

    # 1) Spec shape (NCHW), forcing the Pallas path so the kernel is exercised.
    x = jax.random.normal(key, (2, 4, 16, 16), dtype=jnp.float32)
    module.training = True
    y = jax.block_until_ready(module(x, seed=123, force_pallas=True))
    _check_semantics(x, y, keep_prob)

    # 2) Trailing size not a multiple of 128 (no pad/slice needed).
    x2 = jax.random.normal(jax.random.PRNGKey(1), (4, 3, 10, 10), dtype=jnp.float32)
    y2 = jax.block_until_ready(module(x2, seed=7, force_pallas=True))
    _check_semantics(x2, y2, keep_prob)

    # 3) Larger batch exercising the multi-sample-per-tile packing + auto path.
    x3 = jax.random.normal(jax.random.PRNGKey(2), (16, 64, 16, 16), dtype=jnp.float32)
    y3 = jax.block_until_ready(module(x3, seed=11))
    _check_semantics(x3, y3, keep_prob)

    # 4) Eval mode: identity.
    module.training = False
    y_eval = jax.block_until_ready(module(x))
    assert bool(jnp.allclose(y_eval, x)), "eval mode must be identity"

    print("KERNEL_OK")
</pallas_src>

<mosaic_0001>
module attributes {stable_mosaic.version = 11 : i64} {
  func.func @_drop_path_kernel(%arg0: i32, %arg1: i32, %arg2: memref<2x1xf32, #tpu.memory_space<vmem>>, %arg3: memref<2x1024xf32, #tpu.memory_space<vmem>>, %arg4: memref<2x1024xf32, #tpu.memory_space<vmem>>) attributes {dimension_semantics = [#tpu.dimension_semantics<parallel>, #tpu.dimension_semantics<parallel>], iteration_bounds = array<i64: 1, 1>, scalar_prefetch = 0 : i64, scratch_operands = 0 : i64, tpu.core_type = #tpu.core_type<tc>, window_params = [{transform_indices = @transform_0, window_bounds = array<i64: 2, 1>}, {transform_indices = @transform_1, window_bounds = array<i64: 2, 1024>}, {transform_indices = @transform_2, window_bounds = array<i64: 2, 1024>}]} {
    %c0 = arith.constant 0 : index
    %c0_0 = arith.constant 0 : index
    %0 = vector.load %arg3[%c0, %c0_0] : memref<2x1024xf32, #tpu.memory_space<vmem>>, vector<2x1024xf32>
    %c0_1 = arith.constant 0 : index
    %c0_2 = arith.constant 0 : index
    %1 = vector.load %arg2[%c0_1, %c0_2] : memref<2x1xf32, #tpu.memory_space<vmem>>, vector<2x1xf32>
    %2 = vector.broadcast %1 : vector<2x1xf32> to vector<2x1024xf32>
    %3 = arith.mulf %0, %2 : vector<2x1024xf32>
    %c0_3 = arith.constant 0 : index
    %c0_4 = arith.constant 0 : index
    %4 = vector.load %arg4[%c0_3, %c0_4] : memref<2x1024xf32, #tpu.memory_space<vmem>>, vector<2x1024xf32>
    tpu.vector_store %arg4[%c0_3, %c0_4], %3 {strides = array<i32>} : memref<2x1024xf32, #tpu.memory_space<vmem>>, vector<2x1024xf32>,
    return
  }
  func.func @transform_0(%arg0: i32, %arg1: i32) -> (i32, i32) {
    %c0_i32 = arith.constant 0 : i32
    %c0_i32_0 = arith.constant 0 : i32
    return %arg0, %c0_i32 : i32, i32
  }
  func.func @transform_1(%arg0: i32, %arg1: i32) -> (i32, i32) {
    %c0_i32 = arith.constant 0 : i32
    return %arg0, %arg1 : i32, i32
  }
  func.func @transform_2(%arg0: i32, %arg1: i32) -> (i32, i32) {
    %c0_i32 = arith.constant 0 : i32
    return %arg0, %arg1 : i32, i32
  }
}

</mosaic_0001>

<bundles_post_ra>
// kernel: tpu_custom_call.1
= control target key start
LH: loop header
LB: loop body
LE: loop exit
PB: predicated region body
PF: predicated region fallthrough
CT: control target
= control target key end

     0   :  { %7 = vsyncpa [#allocation3], 0  ;;  %s144_s0 = inlined_call_operand.vmem [shape: f32[2,1], index: 0, kind: input, shape index: {}]   ;;  %s145_s1 = inlined_call_operand.hbm [shape: f32[2,1024], index: 1, kind: input, shape index: {}]   ;;  %s146_s2 = inlined_call_operand.hbm [shape: f32[2,1024], index: 2, kind: output, shape index: {}]  }
   0x1   :  { %8 = vsyncpa [#allocation4], 0  ;;  %s16_s11 = sshll.u32 %s145_s1, 4  ;;  %s116_s12 = smov [#allocation2]   ;;  %s17_s11 = int_to_ptr.hbm [resolvable:$true] %s16_s11 }
   0x2   :  { %s18_s13 = sshll.u32 %s116_s12, 4  ;;  %s19_s13 = int_to_ptr.vmem [resolvable:$true] %s18_s13 }
   0x3   :  { %21 = dma.hbm_to_vmem [thread:$0]  %s17_s11, 256, %s19_s13, [#allocation3]  }
   0x4   :  { %112 = dma.done.wait [#allocation3], 256  }
   0x5   :  { %113 = vsyncadd [#allocation3], 4294967040  ;;  %v117_v0 = vmov 0   ;;  %v28_v1 = vld [vmem:[%s144_s0] sm:$0x3]  ;;  %v27_v7 = vld [vmem:[#allocation2 + $0x8] sm:$0xff] }
   0x6   :  { %63 = vset.pattern.permute.xlu0 %v117_v0  ;;  %v118_v2 = vmov 269488144   ;;  %v26_v6 = vld [vmem:[#allocation2] sm:$0xff]  ;;  %s119_s1 = smov [#allocation5]   ;;  %s49_s19 = sshll.u32 %s146_s2, 4  ;;  %s50_s19 = int_to_ptr.hbm [resolvable:$true] %s49_s19 }
   0x7   :  { %31 = vperm.xlu0 %63, %v28_v1   ;;  %v34_v3 = vunpack.c.l.s4 %v118_v2  ;;  %s47_s16 = sshll.u32 %s119_s1, 4  ;;  %s48_s16 = int_to_ptr.vmem [resolvable:$true] %s47_s16 }
   0x9   :  { %v35_v4 = vunpack.c.0.s8 %v34_v3 }
  0x79   :  { %v32_v5 = vpop.permute.xlu0 %31 }
  0x7a   :  { %v36_v8 = vperm.slane %v32_v5, %v35_v4 }
  0x7c   :  { %v38_v9 = vmul.f32 %v36_v8, %v26_v6  ;;  %v39_v10 = vmul.f32 %v36_v8, %v27_v7 }
  0x7e   :  { %40 = vst [vmem:[#allocation5] sm:$0xff] %v38_v9 }
  0x7f   :  { %41 = vst [vmem:[#allocation5 + $0x8] sm:$0xff] %v39_v10 }
  0x80   :  { %52 = dma.vmem_to_hbm [thread:$0]  %s48_s16, 256, %s50_s19, [#allocation4]  }
  0x81   :  { %114 = dma.done.wait [#allocation4], 256  }
  0x82   :  { %115 = vsyncadd [#allocation4], 4294967040 }
  0x83   :  { %57 = vsyncpa [#allocation3], 1 }
  0x84   :  { %58 = vsyncpa [#allocation4], 1 }

</bundles_post_ra>
